<compile_context>
chip_gen: v7x
topology: tpu7x:2x2x1
jax: 0.10.0
libtpu: 0.0.40
codegen_flags: <defaults>
</compile_context>

<pallas_src>
import functools

import jax
import jax.numpy as jnp
from jax.experimental import pallas as pl
from jax.experimental.pallas import tpu as pltpu

_LANE = 128


def _vmem_limit_bytes():
    """Half of physical VMEM, capped at 64 MiB (64 MiB on v5e/v6e, 32 MiB on v7x)."""
    cap = 128 * 1024 * 1024
    try:
        cap = int(pltpu.get_tpu_info().vmem_capacity_bytes)
    except Exception:  # interpret mode / AOT on CPU / older jax
        pass
    return min(cap // 2, 64 * 1024 * 1024)


def _resident_spec(block_shape, index_map):
    """BlockSpec for an operand whose block never changes across the grid.

    Requests single buffering so Pallas does not allocate a second pipeline
    buffer for it (VMEM headroom, esp. on v7x); silently falls back to the
    default buffering if `pipeline_mode` is unavailable.
    """
    if hasattr(pl, "Buffered"):
        try:
            return pl.BlockSpec(block_shape, index_map, pipeline_mode=pl.Buffered(1))
        except TypeError:
            pass
    return pl.BlockSpec(block_shape, index_map)


def _pick_tile(m, bytes_per_row, vmem_budget, preferred=(1024, 512, 256, 128)):
    """Largest MXU-friendly M tile that also fits the per-row VMEM budget."""
    for t in preferred:
        if m >= t and t * bytes_per_row <= vmem_budget:
            return t
    return m if m < preferred[-1] else preferred[-1]


def _proj_kernel(x_ref, w_ref, b_ref, o_ref):
    """General path: x_ref (tm, K) bf16 patch rows, w_ref (K, E) bf16, b_ref (1, E) f32."""
    acc = jnp.dot(x_ref[...], w_ref[...], preferred_element_type=jnp.float32)
    o_ref[...] = (acc + b_ref[...]).astype(o_ref.dtype)


def _proj_kernel_nchw(x_ref, w_ref, b_ref, o_ref):
    """Fused P==1 path: x_ref (1, C, tm) straight from the NCHW tensor.

    bf16 downcast first (VPU), then the (C, tm) -> (tm, C) relayout in VMEM
    (XLU) on the half-width data, then the MXU matmul with f32 accumulation.
    No HBM transpose of the activations is ever materialized.
    """
    lhs = x_ref[0].astype(jnp.bfloat16)                                   # (C, tm)
    acc = jnp.dot(lhs.T, w_ref[...], preferred_element_type=jnp.float32)  # (tm, E)
    o_ref[0] = (acc + b_ref[...]).astype(o_ref.dtype)


def vit_embedding(x_nchw, weight, bias, patch_size, *, out_dtype=None):
    """ViT patch embedding (Conv2d k=s=P + flatten + transpose), PyTorch semantics.

    Args:
      x_nchw: (N, C, H, W) input feature map.
      weight: (E, C, P, P) Conv2d weight.
      bias:   (E,) Conv2d bias.
      patch_size: P.
      out_dtype: optional output dtype (e.g. jnp.bfloat16 to halve store traffic);
        defaults to x_nchw.dtype.

    Returns:
      (N, n_h * n_w, E) embeddings.
    """
    n, c, h, w = x_nchw.shape
    e = weight.shape[0]
    p = patch_size
    n_h, n_w = h // p, w // p
    seq = n_h * n_w
    out_dtype = x_nchw.dtype if out_dtype is None else jnp.dtype(out_dtype)
    x_itemsize = x_nchw.dtype.itemsize
    out_itemsize = jnp.dtype(out_dtype).itemsize

    vmem_limit = _vmem_limit_bytes()
    b_row = bias.astype(jnp.float32).reshape(1, e)

    if p == 1:
        # ---- fused path: no HBM transpose / extra round trip of the activations ----
        x3 = x_nchw.reshape(n, c, seq)                        # metadata-only reshape
        w_mat = weight.reshape(e, c).T.astype(jnp.bfloat16)   # (C, E), tiny one-off

        # Per-M-row working set: double-buffered x column + double-buffered out row.
        bytes_per_row = 2 * (c * x_itemsize + e * out_itemsize)
        budget = vmem_limit - (c * e * 2 + 4 * e) - (2 << 20)  # resident W/bias + slack
        tm = _pick_tile(seq, bytes_per_row, max(budget, 1 << 20))
        # v7x megacore: make sure both TensorCores get at least one parallel block.
        while n * pl.cdiv(seq, tm) < 2 and tm > _LANE:
            tm //= 2
        grid = (n, pl.cdiv(seq, tm))

        flops = 2 * n * seq * c * e
        bytes_accessed = (x3.size * x_itemsize + w_mat.size * 2 + b_row.size * 4
                          + n * seq * e * out_itemsize)

        out = pl.pallas_call(
            _proj_kernel_nchw,
            out_shape=jax.ShapeDtypeStruct((n, seq, e), out_dtype),
            grid_spec=pltpu.PrefetchScalarGridSpec(
                num_scalar_prefetch=0,
                grid=grid,
                in_specs=[
                    pl.BlockSpec((1, c, tm), lambda b, i: (b, 0, i)),  # NCHW slab
                    _resident_spec((c, e), lambda b, i: (0, 0)),       # resident W
                    _resident_spec((1, e), lambda b, i: (0, 0)),       # resident bias
                ],
                out_specs=pl.BlockSpec((1, tm, e), lambda b, i: (b, i, 0)),
            ),
            compiler_params=pltpu.CompilerParams(
                dimension_semantics=("parallel", "parallel"),
                vmem_limit_bytes=vmem_limit),
            cost_estimate=pl.CostEstimate(
                flops=flops, transcendentals=0, bytes_accessed=bytes_accessed),
        )(x3, w_mat, b_row)
        return out

    # ---- p > 1: general patch-projection path ----
    # TODO(synk): fuse this patch extraction into the kernel (DMA (1, C, rb*P, W)
    # NCHW slabs and relayout (C, rb, P, n_w, P) -> (rb*n_w, C*P*P) in VMEM) to
    # remove the extra HBM round trip; kept in XLA (fused with the bf16 downcast
    # so the intermediate is half-sized) because the 5-D in-kernel transpose is
    # not reliably lowerable by Mosaic.
    k = c * p * p
    patches = x_nchw.reshape(n, c, n_h, p, n_w, p)
    patches = patches.transpose(0, 2, 4, 1, 3, 5)
    patches = patches.reshape(n * seq, k).astype(jnp.bfloat16)

    w_mat = weight.reshape(e, k).T.astype(jnp.bfloat16)        # (K, E), tiny one-off

    m_total = n * seq
    bytes_per_row = 2 * (k * 2 + e * out_itemsize)
    budget = vmem_limit - (k * e * 2 + 4 * e) - (2 << 20)
    tm = _pick_tile(m_total, bytes_per_row, max(budget, 1 << 20))
    while pl.cdiv(m_total, tm) < 2 and tm > _LANE:              # keep both v7x TCs busy
        tm //= 2
    grid = (pl.cdiv(m_total, tm),)

    flops = 2 * m_total * k * e
    bytes_accessed = (patches.size * 2 + w_mat.size * 2 + b_row.size * 4
                      + m_total * e * out_itemsize)

    out = pl.pallas_call(
        _proj_kernel,
        out_shape=jax.ShapeDtypeStruct((m_total, e), out_dtype),
        grid_spec=pltpu.PrefetchScalarGridSpec(
            num_scalar_prefetch=0,
            grid=grid,
            in_specs=[
                pl.BlockSpec((tm, k), lambda i: (i, 0)),       # patch rows
                _resident_spec((k, e), lambda i: (0, 0)),      # resident W
                _resident_spec((1, e), lambda i: (0, 0)),      # resident bias
            ],
            out_specs=pl.BlockSpec((tm, e), lambda i: (i, 0)),
        ),
        compiler_params=pltpu.CompilerParams(
            dimension_semantics=("parallel",),
            vmem_limit_bytes=vmem_limit),
        cost_estimate=pl.CostEstimate(
            flops=flops, transcendentals=0, bytes_accessed=bytes_accessed),
    )(patches, w_mat, b_row)
    return out.reshape(n, seq, e)


def _reference(x_nchw, weight, bias, patch_size):
    """Pure-JAX f32 reference: strided conv + reshape + permute (PyTorch semantics)."""
    y = jax.lax.conv_general_dilated(
        x_nchw, weight,
        window_strides=(patch_size, patch_size),
        padding="VALID",
        dimension_numbers=("NCHW", "OIHW", "NCHW"),
    ) + bias[None, :, None, None]
    n, e, n_h, n_w = y.shape
    return y.reshape(n, e, n_h * n_w).transpose(0, 2, 1)


if __name__ == "__main__":
    key = jax.random.PRNGKey(0)
    k1, k2, k3, k4, k5, k6 = jax.random.split(key, 6)

    batch, in_channels, spatial, embedding_dim = 2, 16, 16, 128

    # Config A: patch_size=1 (module default) -> fused no-HBM-transpose path.
    p1 = 1
    x1 = jax.random.normal(k1, (batch, in_channels, spatial, spatial), jnp.float32)
    w1 = jax.random.normal(k2, (embedding_dim, in_channels, p1, p1), jnp.float32) * 0.02
    b1 = jax.random.normal(k3, (embedding_dim,), jnp.float32) * 0.02
    fn1 = jax.jit(functools.partial(vit_embedding, patch_size=p1))
    out1 = fn1(x1, w1, b1)
    jax.block_until_ready(out1)
    ref1 = _reference(x1, w1, b1, p1)
    assert out1.shape == (batch, spatial * spatial, embedding_dim), out1.shape
    assert jnp.allclose(out1, ref1, atol=2e-2, rtol=2e-2), "P=1 mismatch vs reference"

    # Config A': bf16 output flag (halves the dominant HBM store traffic).
    fn1b = jax.jit(functools.partial(vit_embedding, patch_size=p1,
                                     out_dtype=jnp.bfloat16))
    out1b = fn1b(x1, w1, b1)
    jax.block_until_ready(out1b)
    assert out1b.dtype == jnp.bfloat16
    assert jnp.allclose(out1b.astype(jnp.float32), ref1, atol=3e-2, rtol=3e-2), \
        "bf16-output mismatch vs reference"

    # Config B: patch_size=2 -> general patch-projection path.
    p2 = 2
    x2 = jax.random.normal(k4, (batch, in_channels, spatial, spatial), jnp.float32)
    w2 = jax.random.normal(k5, (embedding_dim, in_channels, p2, p2), jnp.float32) * 0.02
    b2 = jax.random.normal(k6, (embedding_dim,), jnp.float32) * 0.02
    fn2 = jax.jit(functools.partial(vit_embedding, patch_size=p2))
    out2 = fn2(x2, w2, b2)
    jax.block_until_ready(out2)
    ref2 = _reference(x2, w2, b2, p2)
    assert out2.shape == (batch, (spatial // p2) ** 2, embedding_dim), out2.shape
    assert jnp.allclose(out2, ref2, atol=2e-2, rtol=2e-2), "P=2 mismatch vs reference"

    print("KERNEL_OK")
</pallas_src>

<mosaic_0001>
module attributes {stable_mosaic.version = 11 : i64} {
  func.func @_proj_kernel_nchw(%arg0: i32, %arg1: i32, %arg2: memref<1x16x256xf32, #tpu.memory_space<vmem>>, %arg3: memref<16x128xbf16, #tpu.memory_space<vmem>>, %arg4: memref<1x128xf32, #tpu.memory_space<vmem>>, %arg5: memref<1x256x128xf32, #tpu.memory_space<vmem>>) attributes {dimension_semantics = [#tpu.dimension_semantics<parallel>, #tpu.dimension_semantics<parallel>], iteration_bounds = array<i64: 2, 1>, scalar_prefetch = 0 : i64, scratch_operands = 0 : i64, tpu.core_type = #tpu.core_type<tc>, window_params = [{transform_indices = @transform_0, window_bounds = array<i64: 1, 16, 256>}, {pipeline_mode = #tpu.pipeline_mode<synchronous>, transform_indices = @transform_1, window_bounds = array<i64: 16, 128>}, {pipeline_mode = #tpu.pipeline_mode<synchronous>, transform_indices = @transform_2, window_bounds = array<i64: 1, 128>}, {transform_indices = @transform_3, window_bounds = array<i64: 1, 256, 128>}]} {
    %c0 = arith.constant 0 : index
    %c0_0 = arith.constant 0 : index
    %c0_1 = arith.constant 0 : index
    %0 = vector.load %arg2[%c0, %c0_0, %c0_1] : memref<1x16x256xf32, #tpu.memory_space<vmem>>, vector<1x16x256xf32>
    %1 = vector.shape_cast %0 : vector<1x16x256xf32> to vector<16x256xf32>
    %2 = arith.truncf %1 : vector<16x256xf32> to vector<16x256xbf16>
    %3 = tpu.transpose %2, [1, 0] : vector<16x256xbf16> -> vector<256x16xbf16>
    %c0_2 = arith.constant 0 : index
    %c0_3 = arith.constant 0 : index
    %4 = vector.load %arg3[%c0_2, %c0_3] : memref<16x128xbf16, #tpu.memory_space<vmem>>, vector<16x128xbf16>
    %cst = arith.constant dense<0.000000e+00> : vector<256x128xf32>
    %5 = tpu.matmul %3, %4, %cst {dimension_numbers = #tpu.dot_dimension_numbers<[1], [0], [0], [1], [0, 0, 1, 1], [], []>} : vector<256x16xbf16>, vector<16x128xbf16>, vector<256x128xf32> -> vector<256x128xf32>
    %c0_4 = arith.constant 0 : index
    %c0_5 = arith.constant 0 : index
    %6 = vector.load %arg4[%c0_4, %c0_5] : memref<1x128xf32, #tpu.memory_space<vmem>>, vector<1x128xf32>
    %7 = vector.broadcast %6 : vector<1x128xf32> to vector<256x128xf32>
    %8 = arith.addf %5, %7 : vector<256x128xf32>
    %c0_6 = arith.constant 0 : index
    %c0_7 = arith.constant 0 : index
    %c0_8 = arith.constant 0 : index
    %9 = vector.load %arg5[%c0_6, %c0_7, %c0_8] : memref<1x256x128xf32, #tpu.memory_space<vmem>>, vector<1x256x128xf32>
    %10 = vector.shape_cast %9 : vector<1x256x128xf32> to vector<256x128xf32>
    %11 = vector.shape_cast %8 : vector<256x128xf32> to vector<1x256x128xf32>
    tpu.vector_store %arg5[%c0_6, %c0_7, %c0_8], %11 {strides = array<i32>} : memref<1x256x128xf32, #tpu.memory_space<vmem>>, vector<1x256x128xf32>,
    return
  }
  func.func @transform_0(%arg0: i32, %arg1: i32) -> (i32, i32, i32) {
    %c0_i32 = arith.constant 0 : i32
    %c0_i32_0 = arith.constant 0 : i32
    return %arg0, %c0_i32, %arg1 : i32, i32, i32
  }
  func.func @transform_1(%arg0: i32, %arg1: i32) -> (i32, i32) {
    %c0_i32 = arith.constant 0 : i32
    %c0_i32_0 = arith.constant 0 : i32
    %c0_i32_1 = arith.constant 0 : i32
    return %c0_i32, %c0_i32_0 : i32, i32
  }
  func.func @transform_2(%arg0: i32, %arg1: i32) -> (i32, i32) {
    %c0_i32 = arith.constant 0 : i32
    %c0_i32_0 = arith.constant 0 : i32
    %c0_i32_1 = arith.constant 0 : i32
    return %c0_i32, %c0_i32_0 : i32, i32
  }
  func.func @transform_3(%arg0: i32, %arg1: i32) -> (i32, i32, i32) {
    %c0_i32 = arith.constant 0 : i32
    %c0_i32_0 = arith.constant 0 : i32
    return %arg0, %arg1, %c0_i32 : i32, i32, i32
  }
}

</mosaic_0001>

<bundles_post_ra>
// kernel: vit_embedding.1
= control target key start
LH: loop header
LB: loop body
LE: loop exit
PB: predicated region body
PF: predicated region fallthrough
CT: control target
= control target key end

     0   :  { %8 = vsyncpa [#allocation3], 0  ;;  %s1383_s0 = inlined_call_operand.hbm [shape: f32[2,16,256], index: 0, kind: input, shape index: {}]   ;;  %s1384_s1 = inlined_call_operand.hbm [shape: bf16[16,128], index: 1, kind: input, shape index: {}]   ;;  %s1385_s2 = inlined_call_operand.hbm [shape: f32[1,128], index: 2, kind: input, shape index: {}]   ;;  %s1386_s3 = inlined_call_operand.hbm [shape: f32[2,256,128], index: 3, kind: output, shape index: {}]  }
   0x1   :  { %10 = vsyncpa [#allocation3 + $0x1], 0 }
   0x2   :  { %11 = vsyncpa [#allocation6], 0 }
   0x3   :  { %12 = vsyncpa [#allocation4], 0 }
   0x4   :  { %14 = vsyncpa [#allocation4 + $0x1], 0  ;;  %s1041_s12 = smov 0   ;;  %s1043_s13 = smov 0  }
   0x5   :  { %s1045_s14 = smov 0   ;;  %s1047_s15 = smov 0  }
   0x6   :  { %s1049_s16 = smov 0   ;;  %s1051_s17 = smov 0  }
   0x7 LB: > { %s654_s18 = sadd.s32 4294967295, %s1009_s17   ;;  %s655_s19 = sadd.s32 4294967294, %s1009_s17   ;;  %s1009_s17 = sphi %s1051_s17, %s20_s17   ;;  %s1005_s16 = sphi %s1049_s16, %s1408_s16   ;;  %s1001_s15 = sphi %s1047_s15, %s1407_s15   ;;  %s997_s14 = sphi %s1045_s14, %s1406_s14   ;;  %s993_s13 = sphi %s1043_s13, %s1405_s13   ;;  %s989_s12 = sphi %s1041_s12, %s1404_s12  }
   0x8   : > { %p54_p0 = scmp.ne.s32.totalorder %s993_s13, %s989_s12  ;;  %p1075_p1 = scmp.eq.s32.totalorder %s654_s18, 0 }
   0x9   : > { %p1079_p2 = scmp.eq.s32.totalorder %s654_s18, 1  ;;  %p128_p3 = scmp.eq.s32.totalorder %s655_s19, 1 }
   0xa   : > { %s1391_s20 = scalar_select %p1075_p1, 1, 0 }
   0xb   : > { %p1085_p4 = por %p1075_p1, %p54_p0  ;;  %p656_p5 = scmp.ge.s32.totalorder %s1009_s17, 1 }
   0xc   : > { %p1090_p6 = por %p128_p3, %p54_p0  ;;  %p135_p7 = scmp.lt.s32.totalorder %s1009_s17, 3 }
   0xd   : > { %s1393_s22 = scalar_select %p1085_p4, 1, 0 }
   0xe   : > { %s1394_s23 = scalar_select %p1090_p6, 1, 0 }
   0xf   : > { %p1095_p8 = pnand %p656_p5, %p135_p7  ;;  %s1011_s25 = smov [#allocation5]  }
  0x10   : > { %s147_s26 = sshll.u32 %s1011_s25, 4  ;;  %s1012_s28 = smov [#allocation7]   ;;  %s1099_s26 = int_to_ptr.vmem [resolvable:$true] %s147_s26 }
  0x11   : > { %p758_p9 = pneg %p1095_p8  ;;  %s161_s29 = sshll.u32 %s1012_s28, 4  ;;  %s1110_s29 = int_to_ptr.vmem [resolvable:$true] %s161_s29 }
  0x12   : > { %s837_s5 = scalar_lea.hbm %s1384_s1, 128 }
  0x13   : > { %p1106_p11 = pnand %p758_p9, %p1075_p1  ;;  %p838_p12 = scmp.ne.s32.totalorder %s1384_s1, %s837_s5 }
  0x14   : > { %p844_p5 = scmp.lt.u32.totalorder %s837_s5, %s1384_s1 }
  0x15   : > { %p839_p13 = pneg %p1106_p11 }
  0x17   : > { %p840_p0 = pnand %p839_p13, %p838_p12 }
  0x19   : > { %p841_p3 = pneg %p840_p0 }
  0x1b   : > { %p846_p7 = pnand %p844_p5, %p841_p3 }
  0x1d   : > { %849 = shalt.err (!%p846_p7)
}
  0x1e   : > { %s850_s10 = scalar_lea.vmem %s1099_s26, 128  ;;  %p858_p1 = scmp.lt.s32.totalorder %s1099_s26, %s1099_s26 }
  0x1f   : > { %p851_p9 = scmp.ne.s32.totalorder %s1099_s26, %s850_s10  ;;  %p859_p12 = scmp.lt.s32.totalorder %s850_s10, %s850_s10 }
  0x21   : > { %p853_p10 = pnand %p851_p9, %p839_p13  ;;  %p860_p0 = por %p859_p12, %p858_p1 }
  0x23   : > { %p854_p6 = pneg %p853_p10 }
  0x25   : > { %p861_p4 = pnand %p860_p0, %p854_p6 }
  0x27   : > { %864 = shalt.err (!%p861_p4)
}
  0x28   : > { %s1013_s11 = smov 64   ;;  %s1014_s18 = smov 4  }
  0x29   : > { %761 = dma.hbm_to_vmem [thread:$0]  (!%p1106_p11), %s1384_s1, 128, %s1099_s26, [#allocation6], %s1013_s11, %s1013_s11, %s1014_s18  }
  0x2a   : > { %s865_s4 = scalar_lea.hbm %s1385_s2, 16 }
  0x2b   : > { %p866_p1 = scmp.ne.s32.totalorder %s1385_s2, %s865_s4  ;;  %p872_p10 = scmp.lt.u32.totalorder %s865_s4, %s1385_s2 }
  0x2d   : > { %p868_p4 = pnand %p866_p1, %p839_p13 }
  0x2f   : > { %p869_p6 = pneg %p868_p4 }
  0x31   : > { %p874_p3 = pnand %p872_p10, %p869_p6 }
  0x33   : > { %877 = shalt.err (!%p874_p3)
}
  0x34   : > { %s878_s26 = scalar_lea.vmem %s1110_s29, 16  ;;  %s885_s9 = scalar_lea.vmem %s1110_s29, 32 }
  0x35   : > { %p879_p5 = scmp.ne.s32.totalorder %s1110_s29, %s878_s26  ;;  %p886_p12 = scmp.lt.s32.totalorder %s1110_s29, %s1110_s29 }
  0x36   : > { %p887_p0 = scmp.lt.s32.totalorder %s885_s9, %s878_s26 }
  0x37   : > { %p881_p7 = pnand %p879_p5, %p839_p13 }
  0x38   : > { %p888_p1 = por %p887_p0, %p886_p12 }
  0x39   : > { %p882_p9 = pneg %p881_p7 }
  0x3b   : > { %p889_p4 = pnand %p888_p1, %p882_p9 }
  0x3d   : > { %892 = shalt.err (!%p889_p4)
}
  0x3e   : > { %764 = dma.hbm_to_vmem [thread:$0]  (!%p1106_p11), %s1385_s2, 16, %s1110_s29, [#allocation6]  }
  0x3f   : > { %s32_s18 = sadd.s32 1, %s1005_s16  ;;  %s41_s19 = sadd.s32 1, %s997_s14 }
  0x40   : > { %p34_p13 = scmp.ge.s32.totalorder %s32_s18, 2  ;;  %p48_p6 = scmp.ne.s32.totalorder %s997_s14, %s993_s13 }
  0x41   : > { %p49_p10 = scmp.eq.s32.totalorder %s1009_s17, 0  ;;  %p775_p3 = scmp.lt.s32.totalorder %s1009_s17, 2 }
  0x42   : > { %s1410_s18 = smov (%p34_p13, %s32_s18), 0  ;;  %p1175_p7 = por %p1079_p2, %p48_p6 }
  0x43   : > { %p50_p5 = por %p49_p10, %p48_p6  ;;  %s36_s25 = ssub.s32 %s1005_s16, %s1410_s18 }
  0x44   : > { %s1397_s27 = scalar_select %p1175_p7, 1, 0 }
  0x45   : > { %s172_s28 = sand.u32 1, %s997_s14   ;;  %p39_p9 = scmp.eq.s32.totalorder %s36_s25, 0 }
  0x46   : > { %s660_s29 = sshll.u32 %s172_s28, 5  ;;  %s691_s30 = sshll.u32 %s1005_s16, 9 }
  0x47   : > { %s1184_s4 = scalar_select %p39_p9, %s997_s14, %s41_s19  }
  0x48   : > { %s1189_s7 = scalar_lea.hbm %s1383_s0, %s691_s30  ;;  %s176_s21 = scalar_lea.vmem [#allocation2], %s660_s29 }
  0x49   : > { %s185_s8 = sshll.u32 %s176_s21, 4  ;;  %p1193_p2 = pnand %p775_p3, %p50_p5  ;;  %s1197_s8 = int_to_ptr.vmem [resolvable:$true] %s185_s8 }
  0x4a   : > { %s1199_s9 = scalar_lea.sflag [#allocation3], %s172_s28  ;;  %s893_s10 = scalar_lea.hbm %s1189_s7, 512 }
  0x4b   : > { %p894_p11 = scmp.ne.s32.totalorder %s1189_s7, %s893_s10  ;;  %p895_p12 = pneg %p1193_p2 }
  0x4c   : > { %s898_s25 = scalar_lea.hbm %s1383_s0, 1024  ;;  %p899_p4 = scmp.lt.u32.totalorder %s1189_s7, %s1383_s0 }
  0x4d   : > { %p896_p0 = pnand %p895_p12, %p894_p11  ;;  %p900_p13 = scmp.lt.u32.totalorder %s898_s25, %s893_s10 }
  0x4e   : > { %p902_p10 = scmp.lt.u32.totalorder %s893_s10, %s1189_s7 }
  0x4f   : > { %p897_p1 = pneg %p896_p0  ;;  %p901_p6 = por %p900_p13, %p899_p4 }
  0x51   : > { %p903_p3 = por %p902_p10, %p901_p6 }
  0x53   : > { %p904_p5 = pnand %p903_p3, %p897_p1 }
  0x55   : > { %907 = shalt.err (!%p904_p5)
}
  0x56   : > { %s908_s28 = scalar_lea.vmem %s1197_s8, 512  ;;  %s1015_s5 = smov [#allocation2]  }
  0x57   : > { %p909_p9 = scmp.ne.s32.totalorder %s1197_s8, %s908_s28  ;;  %s913_s6 = sshll.u32 %s1015_s5, 4  ;;  %s914_s6 = int_to_ptr.vmem [resolvable:$false] %s913_s6 }
  0x58   : > { %s915_s21 = scalar_lea.vmem %s914_s6, 1024  ;;  %p916_p7 = scmp.lt.s32.totalorder %s1197_s8, %s914_s6 }
  0x59   : > { %p911_p11 = pnand %p909_p9, %p895_p12  ;;  %p917_p4 = scmp.lt.s32.totalorder %s915_s21, %s908_s28 }
  0x5b   : > { %p912_p0 = pneg %p911_p11  ;;  %p918_p13 = por %p917_p4, %p916_p7 }
  0x5d   : > { %p919_p6 = pnand %p918_p13, %p912_p0 }
  0x5f   : > { %922 = shalt.err (!%p919_p6)
}
  0x60   : > { %s1016_s10 = smov 256   ;;  %s1017_s11 = smov 16  }
  0x61   : > { %768 = dma.hbm_to_vmem [thread:$0]  (!%p1193_p2), %s1189_s7, 512, %s1197_s8, %s1199_s9, %s1016_s10, %s1016_s10, %s1017_s11  }
  0x62   : > { %197 = sbr.rel (%p1095_p8) target bundleno = 507 (0x1fb), region = 32  ;;  %s1230_s19 = sand.u32 (!%p1095_p8), 1, %s993_s13  }
  0x63   : > { %s664_s25 = sshll.u32 (!%p1095_p8), %s1230_s19, 5  ;;  %s200_s29 = scalar_lea.sflag (!%p1095_p8), [#allocation3], %s1230_s19 }
  0x64   : > { %s203_s30 = scalar_lea.vmem (!%p1095_p8), [#allocation2], %s664_s25  ;;  %p1399_p7 = scmp.ne.s32.totalorder (!%p1095_p8), %s1393_s22, 0 }
  0x69   : > { %976 = dma.done.wait (%p1399_p7), %s200_s29, 512  }
  0x6a   : > { %978 = vsyncadd (%p1399_p7), %s200_s29, 4294966784  ;;  %p1400_p12 = scmp.ne.s32.totalorder %s1391_s20, 0 }
  0x6c   : > { %980 = dma.done.wait (%p1400_p12), [#allocation6], 144  }
  0x6d   : > { %982 = vsyncadd (%p1400_p12), [#allocation6], 4294967152  ;;  %v237_v0 = vld [vmem:[%s203_s30] sm:$0xff]  ;;  %v239_v1 = vld [vmem:[%s203_s30 + $0x10] sm:$0xff]  ;;  %vm290_vm0 = vcmask 130048   ;;  %s667_s20 = sshll.u32 %s1230_s19, 8 }
  0x6e   : > { %v241_v2 = vpack.c.bf16 %v239_v1, %v237_v0  ;;  %v836_v3 = vld [vmem:[#allocation5] sm:$0xff]   ;;  %v238_v4 = vld [vmem:[%s203_s30 + $0x8] sm:$0xff]  ;;  %v240_v5 = vld [vmem:[%s203_s30 + $0x18] sm:$0xff]  ;;  %s1263_s22 = scalar_lea.vmem [#allocation8], %s667_s20  ;;  %s692_s24 = sshll.u32 %s1001_s15, 12 }
  0x6f   : > { %710 = vmatprep.subr.bf16.mxu0 %v836_v3  ;;  %744 = vmatprep.subr.bf16.mxu1 %v836_v3  ;;  %v242_v6 = vpack.c.bf16 %v240_v5, %v238_v4  ;;  %v1259_v23 = vld [vmem:[#allocation7] ss:$0 sm:$0xff]  ;;  %s548_s7 = sshll.u32 %s1263_s22, 4  ;;  %s1328_s9 = scalar_lea.hbm %s1386_s3, %s692_s24  ;;  %s1330_s7 = int_to_ptr.vmem [resolvable:$true] %s548_s7 }
  0x70   : > { %243 = vxpose.xlu0.c.b16.start.end [1/1] (short) %v241_v2, 128  ;;  %711 = vmatpush3.bf16.msra.mxu0 %v836_v3  ;;  %s533_s15 = scalar_lea.sflag [#allocation4], %s1230_s19  ;;  %s923_s28 = scalar_lea.vmem %s1330_s7, 4096 }
  0x71   : > { %745 = vmatpush3.bf16.msra.mxu1 %v836_v3  ;;  %p924_p8 = scmp.ne.s32.totalorder %s1330_s7, %s923_s28  ;;  %p1401_p2 = scmp.ne.s32.totalorder %s1397_s27, 0 }
  0x72   : > { %s1018_s5 = smov [#allocation8]  }
  0x73   : > { %p925_p1 = pnand %p924_p8, %p1401_p2  ;;  %s927_s6 = sshll.u32 %s1018_s5, 4  ;;  %s928_s6 = int_to_ptr.vmem [resolvable:$false] %s927_s6 }
  0x74   : > { %s929_s21 = scalar_lea.vmem %s928_s6, 8192  ;;  %p930_p3 = scmp.lt.s32.totalorder %s1330_s7, %s928_s6 }
  0x75   : > { %p926_p10 = pneg %p925_p1  ;;  %p931_p5 = scmp.lt.s32.totalorder %s929_s21, %s923_s28 }
  0x77   : > { %p932_p9 = por %p931_p5, %p930_p3 }
  0x79   : > { %p933_p11 = pnand %p932_p9, %p926_p10 }
  0x8d   : > { %259 = vxpose.xlu0.c.b16.start.end [1/1] (short) %v242_v6, 128 }
  0xd6   : > { %v251_v7 = vpop.trf.xlu0 }
  0xd7   : > { %712 = vmatprep.mubr.msk.bf16.mxu0 %vm290_vm0, %v251_v7 }
  0xda   : > { %v252_v8 = vpop.trf.xlu0 }
  0xdb   : > { %713 = vmatmul.mubr.msk.bf16.vlgmr.msra.gmra.mrb[0].mxu0 %vm290_vm0, %v252_v8 }
  0xde   : > { %v253_v9 = vpop.trf.xlu0 }
  0xdf   : > { %716 = vmatprep.mubr.msk.bf16.mxu0 %vm290_vm0, %v253_v9 }
  0xe2   : > { %v254_v10 = vpop.trf.xlu0 }
  0xe3   : > { %717 = vmatmul.mubr.msk.bf16.gmra.mrb[4].mxu0 %vm290_vm0, %v254_v10 }
  0xe6   : > { %v255_v11 = vpop.trf.xlu0 }
  0xe7   : > { %720 = vmatprep.mubr.msk.bf16.mxu0 %vm290_vm0, %v255_v11 }
  0xea   : > { %v256_v12 = vpop.trf.xlu0 }
  0xeb   : > { %721 = vmatmul.mubr.msk.bf16.gmra.mrb[8].mxu0 %vm290_vm0, %v256_v12 }
  0xee   : > { %v257_v13 = vpop.trf.xlu0 }
  0xef   : > { %724 = vmatprep.mubr.msk.bf16.mxu0 %vm290_vm0, %v257_v13 }
  0xf2   : > { %v258_v14 = vpop.trf.xlu0 }
  0xf3   : > { %725 = vmatmul.mubr.msk.bf16.gmra.mrb[12].mxu0 %vm290_vm0, %v258_v14 }
  0xf6   : > { %v267_v15 = vpop.trf.xlu0 }
  0xf7   : > { %728 = vmatprep.mubr.msk.bf16.mxu1 %vm290_vm0, %v267_v15 }
  0xfa   : > { %v268_v16 = vpop.trf.xlu0 }
  0xfb   : > { %729 = vmatmul.mubr.msk.bf16.vlgmr.msra.gmra.mrb[0].mxu1 %vm290_vm0, %v268_v16 }
  0xfe   : > { %v269_v17 = vpop.trf.xlu0 }
  0xff   : > { %732 = vmatprep.mubr.msk.bf16.mxu1 %vm290_vm0, %v269_v17 }
 0x102   : > { %v270_v18 = vpop.trf.xlu0 }
 0x103   : > { %733 = vmatmul.mubr.msk.bf16.gmra.mrb[4].mxu1 %vm290_vm0, %v270_v18 }
 0x106   : > { %v271_v19 = vpop.trf.xlu0 }
 0x107   : > { %736 = vmatprep.mubr.msk.bf16.mxu1 %vm290_vm0, %v271_v19 }
 0x10a   : > { %v272_v20 = vpop.trf.xlu0 }
 0x10b   : > { %737 = vmatmul.mubr.msk.bf16.gmra.mrb[8].mxu1 %vm290_vm0, %v272_v20 }
 0x10e   : > { %v273_v21 = vpop.trf.xlu0 }
 0x10f   : > { %740 = vmatprep.mubr.msk.bf16.mxu1 %vm290_vm0, %v273_v21 }
 0x112   : > { %v274_v22 = vpop.trf.xlu0 }
 0x113   : > { %741 = vmatmul.mubr.msk.bf16.gmra.mrb[12].mxu1 %vm290_vm0, %v274_v22 }
 0x1ae   : > { %v714_v24 = vpop.f32.mrb[0].mxu0 }
 0x1af   : > { %v382_v25 = vadd.f32 %v714_v24, %v1259_v23  ;;  %v373_v26 = vpop.f32.mrb[1].mxu0 }
 0x1b0   : > { %v374_v27 = vadd.f32 %v1259_v23, %v373_v26  ;;  %v715_v28 = vpop.f32.mrb[2].mxu0 }
 0x1b1   : > { %502 = vst [vmem:[%s1263_s22 + $0x10] sm:$0xff] %v382_v25  ;;  %v385_v29 = vadd.f32 %v715_v28, %v1259_v23  ;;  %v376_v30 = vpop.f32.mrb[3].mxu0 }
 0x1b2   : > { %500 = vst [vmem:[%s1263_s22] sm:$0xff] %v374_v27  ;;  %v377_v31 = vadd.f32 %v1259_v23, %v376_v30 }
 0x1b3   : > { %503 = vst [vmem:[%s1263_s22 + $0x18] sm:$0xff] %v385_v29 }
 0x1b4   : > { %501 = vst [vmem:[%s1263_s22 + $0x8] sm:$0xff] %v377_v31 }
 0x1b6   : > { %v718_v32 = vpop.f32.mrb[4].mxu0 }
 0x1b7   : > { %v398_v33 = vadd.f32 %v718_v32, %v1259_v23  ;;  %v389_v34 = vpop.f32.mrb[5].mxu0 }
 0x1b8   : > { %v390_v35 = vadd.f32 %v1259_v23, %v389_v34  ;;  %v719_v36 = vpop.f32.mrb[6].mxu0 }
 0x1b9   : > { %506 = vst [vmem:[%s1263_s22 + $0x30] sm:$0xff] %v398_v33  ;;  %v401_v37 = vadd.f32 %v719_v36, %v1259_v23  ;;  %v392_v38 = vpop.f32.mrb[7].mxu0 }
 0x1ba   : > { %504 = vst [vmem:[%s1263_s22 + $0x20] sm:$0xff] %v390_v35  ;;  %v393_v39 = vadd.f32 %v1259_v23, %v392_v38 }
 0x1bb   : > { %507 = vst [vmem:[%s1263_s22 + $0x38] sm:$0xff] %v401_v37 }
 0x1bc   : > { %505 = vst [vmem:[%s1263_s22 + $0x28] sm:$0xff] %v393_v39 }
 0x1be   : > { %v722_v40 = vpop.f32.mrb[8].mxu0 }
 0x1bf   : > { %v414_v41 = vadd.f32 %v722_v40, %v1259_v23  ;;  %v405_v42 = vpop.f32.mrb[9].mxu0 }
 0x1c0   : > { %v406_v43 = vadd.f32 %v1259_v23, %v405_v42  ;;  %v723_v44 = vpop.f32.mrb[10].mxu0 }
 0x1c1   : > { %510 = vst [vmem:[%s1263_s22 + $0x50] sm:$0xff] %v414_v41  ;;  %v417_v45 = vadd.f32 %v723_v44, %v1259_v23  ;;  %v408_v46 = vpop.f32.mrb[11].mxu0 }
 0x1c2   : > { %508 = vst [vmem:[%s1263_s22 + $0x40] sm:$0xff] %v406_v43  ;;  %v409_v47 = vadd.f32 %v1259_v23, %v408_v46 }
 0x1c3   : > { %511 = vst [vmem:[%s1263_s22 + $0x58] sm:$0xff] %v417_v45 }
 0x1c4   : > { %509 = vst [vmem:[%s1263_s22 + $0x48] sm:$0xff] %v409_v47 }
 0x1c6   : > { %v726_v48 = vpop.f32.mrb[12].mxu0 }
 0x1c7   : > { %v430_v49 = vadd.f32 %v726_v48, %v1259_v23  ;;  %v421_v50 = vpop.f32.mrb[13].mxu0 }
 0x1c8   : > { %v422_v51 = vadd.f32 %v1259_v23, %v421_v50  ;;  %v727_v52 = vpop.f32.mrb[14].mxu0 }
 0x1c9   : > { %514 = vst [vmem:[%s1263_s22 + $0x70] sm:$0xff] %v430_v49  ;;  %v433_v53 = vadd.f32 %v727_v52, %v1259_v23  ;;  %v424_v54 = vpop.f32.mrb[15].mxu0 }
 0x1ca   : > { %512 = vst [vmem:[%s1263_s22 + $0x60] sm:$0xff] %v422_v51  ;;  %v425_v55 = vadd.f32 %v1259_v23, %v424_v54 }
 0x1cb   : > { %515 = vst [vmem:[%s1263_s22 + $0x78] sm:$0xff] %v433_v53 }
 0x1cc   : > { %513 = vst [vmem:[%s1263_s22 + $0x68] sm:$0xff] %v425_v55 }
 0x1ce   : > { %v730_v56 = vpop.f32.mrb[0].mxu1 }
 0x1cf   : > { %v446_v57 = vadd.f32 %v730_v56, %v1259_v23  ;;  %v437_v58 = vpop.f32.mrb[1].mxu1 }
 0x1d0   : > { %v438_v59 = vadd.f32 %v1259_v23, %v437_v58  ;;  %v731_v60 = vpop.f32.mrb[2].mxu1 }
 0x1d1   : > { %518 = vst [vmem:[%s1263_s22 + $0x90] sm:$0xff] %v446_v57  ;;  %v449_v61 = vadd.f32 %v731_v60, %v1259_v23  ;;  %v440_v62 = vpop.f32.mrb[3].mxu1 }
 0x1d2   : > { %516 = vst [vmem:[%s1263_s22 + $0x80] sm:$0xff] %v438_v59  ;;  %v441_v63 = vadd.f32 %v1259_v23, %v440_v62 }
 0x1d3   : > { %519 = vst [vmem:[%s1263_s22 + $0x98] sm:$0xff] %v449_v61 }
 0x1d4   : > { %517 = vst [vmem:[%s1263_s22 + $0x88] sm:$0xff] %v441_v63 }
 0x1d6   : > { %v734_v0 = vpop.f32.mrb[4].mxu1 }
 0x1d7   : > { %v462_v1 = vadd.f32 %v734_v0, %v1259_v23  ;;  %v453_v2 = vpop.f32.mrb[5].mxu1 }
 0x1d8   : > { %v454_v3 = vadd.f32 %v1259_v23, %v453_v2  ;;  %v735_v4 = vpop.f32.mrb[6].mxu1 }
 0x1d9   : > { %522 = vst [vmem:[%s1263_s22 + $0xb0] sm:$0xff] %v462_v1  ;;  %v465_v5 = vadd.f32 %v735_v4, %v1259_v23  ;;  %v456_v6 = vpop.f32.mrb[7].mxu1 }
 0x1da   : > { %520 = vst [vmem:[%s1263_s22 + $0xa0] sm:$0xff] %v454_v3  ;;  %v457_v7 = vadd.f32 %v1259_v23, %v456_v6 }
 0x1db   : > { %523 = vst [vmem:[%s1263_s22 + $0xb8] sm:$0xff] %v465_v5 }
 0x1dc   : > { %521 = vst [vmem:[%s1263_s22 + $0xa8] sm:$0xff] %v457_v7 }
 0x1de   : > { %v738_v8 = vpop.f32.mrb[8].mxu1 }
 0x1df   : > { %v478_v9 = vadd.f32 %v738_v8, %v1259_v23  ;;  %v469_v10 = vpop.f32.mrb[9].mxu1 }
 0x1e0   : > { %v470_v11 = vadd.f32 %v1259_v23, %v469_v10  ;;  %v739_v12 = vpop.f32.mrb[10].mxu1 }
 0x1e1   : > { %526 = vst [vmem:[%s1263_s22 + $0xd0] sm:$0xff] %v478_v9  ;;  %v481_v13 = vadd.f32 %v739_v12, %v1259_v23  ;;  %v472_v14 = vpop.f32.mrb[11].mxu1 }
 0x1e2   : > { %524 = vst [vmem:[%s1263_s22 + $0xc0] sm:$0xff] %v470_v11  ;;  %v473_v15 = vadd.f32 %v1259_v23, %v472_v14 }
 0x1e3   : > { %527 = vst [vmem:[%s1263_s22 + $0xd8] sm:$0xff] %v481_v13 }
 0x1e4   : > { %525 = vst [vmem:[%s1263_s22 + $0xc8] sm:$0xff] %v473_v15 }
 0x1e6   : > { %v742_v16 = vpop.f32.mrb[12].mxu1 }
 0x1e7   : > { %v494_v17 = vadd.f32 %v742_v16, %v1259_v23  ;;  %v485_v18 = vpop.f32.mrb[13].mxu1 }
 0x1e8   : > { %v486_v19 = vadd.f32 %v1259_v23, %v485_v18  ;;  %v743_v20 = vpop.f32.mrb[14].mxu1 }
 0x1e9   : > { %530 = vst [vmem:[%s1263_s22 + $0xf0] sm:$0xff] %v494_v17  ;;  %v497_v21 = vadd.f32 %v743_v20, %v1259_v23  ;;  %v488_v22 = vpop.f32.mrb[15].mxu1 }
 0x1ea   : > { %528 = vst [vmem:[%s1263_s22 + $0xe0] sm:$0xff] %v486_v19  ;;  %v489_v24 = vadd.f32 %v1259_v23, %v488_v22 }
 0x1eb   : > { %531 = vst [vmem:[%s1263_s22 + $0xf8] sm:$0xff] %v497_v21 }
 0x1ec   : > { %529 = vst [vmem:[%s1263_s22 + $0xe8] sm:$0xff] %v489_v24 }
 0x1ed   : > { %936 = shalt.err (!%p933_p11)
}
 0x1ee   : > { %s937_s10 = scalar_lea.hbm %s1328_s9, 4096  ;;  %s941_s29 = scalar_lea.hbm %s1386_s3, 8192 }
 0x1ef   : > { %p938_p0 = scmp.ne.s32.totalorder %s1328_s9, %s937_s10  ;;  %p942_p6 = scmp.lt.u32.totalorder %s1328_s9, %s1386_s3 }
 0x1f0   : > { %p943_p7 = scmp.lt.u32.totalorder %s941_s29, %s937_s10  ;;  %p945_p8 = scmp.lt.u32.totalorder %s937_s10, %s1328_s9 }
 0x1f1   : > { %p939_p4 = pnand %p938_p0, %p1401_p2 }
 0x1f2   : > { %p944_p12 = por %p943_p7, %p942_p6 }
 0x1f3   : > { %p940_p13 = pneg %p939_p4 }
 0x1f4   : > { %p946_p1 = por %p945_p8, %p944_p12 }
 0x1f6   : > { %p947_p10 = pnand %p946_p1, %p940_p13 }
 0x1f8   : > { %950 = shalt.err (!%p947_p10)
}
 0x1f9   : > { %s1019_s22 = smov 128   ;;  %s1020_s24 = smov 8  }
 0x1fa   : > { %756 = dma.vmem_to_hbm [thread:$0]  (%p1401_p2), %s1330_s7, 4096, %s1328_s9, %s533_s15, %s1019_s22, %s1019_s22, %s1020_s24  }
 0x1fb PF: > { %s563_s8 = sand.u32 1, %s989_s12   ;;  %p1402_p3 = scmp.ne.s32.totalorder %s1394_s23, 0 }
 0x1fc   : > { %p1403_p5 = scmp.ge.s32.totalorder %s1009_s17, 2  ;;  %s564_s26 = scalar_lea.sflag [#allocation4], %s563_s8 }
 0x1fe   : > { %p770_p9 = pnand %p1403_p5, %p1402_p3 }
 0x200   : > { %984 = dma.done.wait (!%p770_p9), %s564_s26, 4096  }
 0x201   : > { %986 = vsyncadd (!%p770_p9), %s564_s26, 4294963200  ;;  %s20_s17 = sadd.s32 1, %s1009_s17   ;;  %s1404_s12 = smov %s993_s13 }
 0x202   : > { %p17_p11 = scmp.ge.s32.totalorder %s20_s17, 4   ;;  %s1405_s13 = smov %s997_s14 }
 0x203   : > { %s1406_s14 = smov %s1184_s4  ;;  %s1407_s15 = smov %s1005_s16 }
 0x204   : > { %s1408_s16 = smov %s1410_s18  ;;  %19 = sbr.rel (!%p17_p11) target bundleno = 7 (0x7), region = 85 }
 0x20b   :  { %569 = vsyncpa [#allocation3], 1 }
 0x20c   :  { %571 = vsyncpa [#allocation3 + $0x1], 1 }
 0x20d   :  { %572 = vsyncpa [#allocation6], 1 }
 0x20e   :  { %573 = vsyncpa [#allocation4], 1 }
 0x20f   :  { %575 = vsyncpa [#allocation4 + $0x1], 1 }

</bundles_post_ra>
